<compile_context>
chip_gen: v7x
topology: tpu7x:2x2x1
jax: 0.10.0
libtpu: 0.0.40
codegen_flags: <defaults>
</compile_context>

<pallas_src>
import functools

import jax
import jax.numpy as jnp
from jax.experimental import pallas as pl
from jax.experimental.pallas import tpu as pltpu

Z_SIZE = 20
HIDDEN = 400
IMG_SIZE = 784

HIDDEN_P = 512  # hidden dim zero-padded to a lane multiple (400 -> 512)


def _cdiv(a, b):
    return (a + b - 1) // b


def _round_up(n, m):
    return _cdiv(n, m) * m


def decoder_kernel(x_ref, w1_ref, b1_ref, w2_ref, b2_ref, o_ref):
    # fc1: Linear(20 -> 400) + ReLU.  x cast to bf16 in-kernel; f32 MXU accum.
    x = x_ref[...].astype(jnp.bfloat16)
    h = jnp.dot(x, w1_ref[...], preferred_element_type=jnp.float32)
    h = jnp.maximum(h + b1_ref[...], 0.0)              # f32 bias + ReLU (VPU)

    # fc2: Linear(400 -> 784) + Sigmoid.  Padded hidden cols of h are exactly 0.
    t = jnp.dot(h.astype(w2_ref.dtype), w2_ref[...],
                preferred_element_type=jnp.float32)
    t = t + b2_ref[...]
    # sigmoid(t) = 1 / (1 + exp(-t)): exp + approx reciprocal both on the EUP.
    y = pl.reciprocal(1.0 + jnp.exp(-t), approx=True)

    # bf16 store of the unpadded 784-column tile (6 full vregs + 16-lane tail).
    o_ref[...] = y.astype(o_ref.dtype)


def prepare_params(w1, b1, w2, b2):
    """Zero-pad the hidden dim to 512; weights bf16, biases f32."""
    w1p = jnp.zeros((Z_SIZE, HIDDEN_P), jnp.bfloat16).at[:, :HIDDEN].set(
        w1.astype(jnp.bfloat16))
    b1p = jnp.zeros((1, HIDDEN_P), jnp.float32).at[:, :HIDDEN].set(b1)
    w2p = jnp.zeros((HIDDEN_P, IMG_SIZE), jnp.bfloat16).at[:HIDDEN, :].set(
        w2.astype(jnp.bfloat16))
    b2p = b2.astype(jnp.float32).reshape(1, IMG_SIZE)
    return w1p, b1p, w2p, b2p


@functools.partial(jax.jit, static_argnames=("tb",))
def decoder_forward(x, w1p, b1p, w2p, b2p, *, tb=512):
    """x: (B, Z_SIZE) f32 -> (B, IMG_SIZE) bf16 sigmoid outputs."""
    B = x.shape[0]
    # Balanced batch tiles: at least 2 grid steps once B >= 16 (keeps both v7x
    # TensorCores busy) and Bp - B < TB (no mostly-padding last tile).
    n_tiles = max(_cdiv(B, tb), 2 if B >= 16 else 1)
    TB = _round_up(_cdiv(B, n_tiles), 8)
    Bp = _round_up(B, TB)
    if Bp != B:
        x = jnp.pad(x, ((0, Bp - B), (0, 0)))

    cost = pl.CostEstimate(
        flops=2 * Bp * (Z_SIZE * HIDDEN_P + HIDDEN_P * IMG_SIZE),
        transcendentals=Bp * IMG_SIZE,
        bytes_accessed=(Bp * Z_SIZE * 4            # x (f32)
                        + Z_SIZE * HIDDEN_P * 2    # W1 (bf16)
                        + HIDDEN_P * 4             # b1 (f32)
                        + HIDDEN_P * IMG_SIZE * 2  # W2 (bf16)
                        + IMG_SIZE * 4             # b2 (f32)
                        + Bp * IMG_SIZE * 2),      # out (bf16)
    )

    out = pl.pallas_call(
        decoder_kernel,
        out_shape=jax.ShapeDtypeStruct((Bp, IMG_SIZE), jnp.bfloat16),
        grid=(Bp // TB,),
        in_specs=[
            pl.BlockSpec((TB, Z_SIZE), lambda i: (i, 0)),          # x tile
            pl.BlockSpec((Z_SIZE, HIDDEN_P), lambda i: (0, 0)),    # W1 (VMEM-resident)
            pl.BlockSpec((1, HIDDEN_P), lambda i: (0, 0)),         # b1
            pl.BlockSpec((HIDDEN_P, IMG_SIZE), lambda i: (0, 0)),  # W2 (VMEM-resident)
            pl.BlockSpec((1, IMG_SIZE), lambda i: (0, 0)),         # b2
        ],
        out_specs=pl.BlockSpec((TB, IMG_SIZE), lambda i: (i, 0)),
        compiler_params=pltpu.CompilerParams(
            dimension_semantics=("parallel",)),
        cost_estimate=cost,
    )(x, w1p, b1p, w2p, b2p)

    # Only the (cheap, leading-dim) batch-padding slice remains; no column slice.
    return out if Bp == B else out[:B]


def init_params(key):
    """Deterministic init mimicking nn.Linear's U(-1/sqrt(fan_in), +1/sqrt(fan_in))."""
    k1, k2, k3, k4 = jax.random.split(key, 4)
    bound1 = 1.0 / (Z_SIZE ** 0.5)
    bound2 = 1.0 / (HIDDEN ** 0.5)
    # Stored as (in, out); equivalent to transposing PyTorch's (out, in) layout.
    w1 = jax.random.uniform(k1, (Z_SIZE, HIDDEN), jnp.float32, -bound1, bound1)
    b1 = jax.random.uniform(k2, (1, HIDDEN), jnp.float32, -bound1, bound1)
    w2 = jax.random.uniform(k3, (HIDDEN, IMG_SIZE), jnp.float32, -bound2, bound2)
    b2 = jax.random.uniform(k4, (1, IMG_SIZE), jnp.float32, -bound2, bound2)
    return w1, b1, w2, b2


def reference_forward(x, w1, b1, w2, b2):
    h = jnp.maximum(x @ w1 + b1, 0.0)
    return jax.nn.sigmoid(h @ w2 + b2)


if __name__ == "__main__":
    key = jax.random.PRNGKey(0)
    kx, kp = jax.random.split(key)

    w1, b1, w2, b2 = init_params(kp)
    params_p = prepare_params(w1, b1, w2, b2)

    # Small batch (primary check; single grid step).
    B = 8
    x = jax.random.normal(kx, (B, Z_SIZE), jnp.float32)
    out = jax.block_until_ready(decoder_forward(x, *params_p))
    ref = reference_forward(x, w1, b1, w2, b2)
    assert out.shape == (B, IMG_SIZE)
    # bf16 weights + bf16 output + approx reciprocal vs f32 reference
    # (sigmoid probabilities in [0,1]).
    assert jnp.max(jnp.abs(out.astype(jnp.float32) - ref)) < 2e-2

    # Non-multiple batch exercises batch padding + multi-tile (2-step) grid.
    x2 = jax.random.normal(jax.random.PRNGKey(1), (37, Z_SIZE), jnp.float32)
    out2 = jax.block_until_ready(decoder_forward(x2, *params_p))
    ref2 = reference_forward(x2, w1, b1, w2, b2)
    assert out2.shape == (37, IMG_SIZE)
    assert jnp.max(jnp.abs(out2.astype(jnp.float32) - ref2)) < 2e-2

    print("KERNEL_OK")
</pallas_src>

<mosaic_0001>
module attributes {stable_mosaic.version = 11 : i64} {
  func.func @decoder_kernel(%arg0: i32, %arg1: memref<8x20xf32, #tpu.memory_space<vmem>>, %arg2: memref<20x512xbf16, #tpu.memory_space<vmem>>, %arg3: memref<1x512xf32, #tpu.memory_space<vmem>>, %arg4: memref<512x784xbf16, #tpu.memory_space<vmem>>, %arg5: memref<1x784xf32, #tpu.memory_space<vmem>>, %arg6: memref<8x784xbf16, #tpu.memory_space<vmem>>) attributes {dimension_semantics = [#tpu.dimension_semantics<parallel>], iteration_bounds = array<i64: 1>, scalar_prefetch = 0 : i64, scratch_operands = 0 : i64, tpu.core_type = #tpu.core_type<tc>, window_params = [{transform_indices = @transform_0, window_bounds = array<i64: 8, 20>}, {pipeline_mode = #tpu.pipeline_mode<synchronous>, transform_indices = @transform_1, window_bounds = array<i64: 20, 512>}, {pipeline_mode = #tpu.pipeline_mode<synchronous>, transform_indices = @transform_2, window_bounds = array<i64: 1, 512>}, {pipeline_mode = #tpu.pipeline_mode<synchronous>, transform_indices = @transform_3, window_bounds = array<i64: 512, 784>}, {pipeline_mode = #tpu.pipeline_mode<synchronous>, transform_indices = @transform_4, window_bounds = array<i64: 1, 784>}, {transform_indices = @transform_5, window_bounds = array<i64: 8, 784>}]} {
    %c0 = arith.constant 0 : index
    %c0_0 = arith.constant 0 : index
    %0 = vector.load %arg1[%c0, %c0_0] : memref<8x20xf32, #tpu.memory_space<vmem>>, vector<8x20xf32>
    %1 = arith.truncf %0 : vector<8x20xf32> to vector<8x20xbf16>
    %c0_1 = arith.constant 0 : index
    %c0_2 = arith.constant 0 : index
    %2 = vector.load %arg2[%c0_1, %c0_2] : memref<20x512xbf16, #tpu.memory_space<vmem>>, vector<20x512xbf16>
    %cst = arith.constant dense<0.000000e+00> : vector<8x512xf32>
    %3 = tpu.matmul %1, %2, %cst {dimension_numbers = #tpu.dot_dimension_numbers<[1], [0], [0], [1], [0, 0, 1, 1], [], []>} : vector<8x20xbf16>, vector<20x512xbf16>, vector<8x512xf32> -> vector<8x512xf32>
    %c0_3 = arith.constant 0 : index
    %c0_4 = arith.constant 0 : index
    %4 = vector.load %arg3[%c0_3, %c0_4] : memref<1x512xf32, #tpu.memory_space<vmem>>, vector<1x512xf32>
    %5 = vector.broadcast %4 : vector<1x512xf32> to vector<8x512xf32>
    %6 = arith.addf %3, %5 : vector<8x512xf32>
    %cst_5 = arith.constant 0.000000e+00 : f32
    %7 = vector.broadcast %cst_5 : f32 to vector<8x512xf32>
    %8 = arith.maximumf %6, %7 : vector<8x512xf32>
    %9 = arith.truncf %8 : vector<8x512xf32> to vector<8x512xbf16>
    %c0_6 = arith.constant 0 : index
    %c0_7 = arith.constant 0 : index
    %10 = vector.load %arg4[%c0_6, %c0_7] : memref<512x784xbf16, #tpu.memory_space<vmem>>, vector<512x784xbf16>
    %cst_8 = arith.constant dense<0.000000e+00> : vector<8x784xf32>
    %11 = tpu.matmul %9, %10, %cst_8 {dimension_numbers = #tpu.dot_dimension_numbers<[1], [0], [0], [1], [0, 0, 1, 1], [], []>} : vector<8x512xbf16>, vector<512x784xbf16>, vector<8x784xf32> -> vector<8x784xf32>
    %c0_9 = arith.constant 0 : index
    %c0_10 = arith.constant 0 : index
    %12 = vector.load %arg5[%c0_9, %c0_10] : memref<1x784xf32, #tpu.memory_space<vmem>>, vector<1x784xf32>
    %13 = vector.broadcast %12 : vector<1x784xf32> to vector<8x784xf32>
    %14 = arith.addf %11, %13 : vector<8x784xf32>
    %cst_11 = arith.constant 0.000000e+00 : f32
    %15 = vector.broadcast %cst_11 : f32 to vector<8x784xf32>
    %16 = arith.subf %15, %14 : vector<8x784xf32>
    %17 = math.exp %16 : vector<8x784xf32>
    %cst_12 = arith.constant 1.000000e+00 : f32
    %18 = vector.broadcast %cst_12 : f32 to vector<8x784xf32>
    %19 = arith.addf %18, %17 : vector<8x784xf32>
    %20 = tpu.reciprocal %19 {approx = true} : vector<8x784xf32> -> vector<8x784xf32>
    %21 = arith.truncf %20 : vector<8x784xf32> to vector<8x784xbf16>
    %c0_13 = arith.constant 0 : index
    %c0_14 = arith.constant 0 : index
    %22 = vector.load %arg6[%c0_13, %c0_14] : memref<8x784xbf16, #tpu.memory_space<vmem>>, vector<8x784xbf16>
    tpu.vector_store %arg6[%c0_13, %c0_14], %21 {strides = array<i32>} : memref<8x784xbf16, #tpu.memory_space<vmem>>, vector<8x784xbf16>,
    return
  }
  func.func @transform_0(%arg0: i32) -> (i32, i32) {
    %c0_i32 = arith.constant 0 : i32
    %c0_i32_0 = arith.constant 0 : i32
    return %arg0, %c0_i32 : i32, i32
  }
  func.func @transform_1(%arg0: i32) -> (i32, i32) {
    %c0_i32 = arith.constant 0 : i32
    %c0_i32_0 = arith.constant 0 : i32
    %c0_i32_1 = arith.constant 0 : i32
    return %c0_i32, %c0_i32_0 : i32, i32
  }
  func.func @transform_2(%arg0: i32) -> (i32, i32) {
    %c0_i32 = arith.constant 0 : i32
    %c0_i32_0 = arith.constant 0 : i32
    %c0_i32_1 = arith.constant 0 : i32
    return %c0_i32, %c0_i32_0 : i32, i32
  }
  func.func @transform_3(%arg0: i32) -> (i32, i32) {
    %c0_i32 = arith.constant 0 : i32
    %c0_i32_0 = arith.constant 0 : i32
    %c0_i32_1 = arith.constant 0 : i32
    return %c0_i32, %c0_i32_0 : i32, i32
  }
  func.func @transform_4(%arg0: i32) -> (i32, i32) {
    %c0_i32 = arith.constant 0 : i32
    %c0_i32_0 = arith.constant 0 : i32
    %c0_i32_1 = arith.constant 0 : i32
    return %c0_i32, %c0_i32_0 : i32, i32
  }
  func.func @transform_5(%arg0: i32) -> (i32, i32) {
    %c0_i32 = arith.constant 0 : i32
    %c0_i32_0 = arith.constant 0 : i32
    return %arg0, %c0_i32 : i32, i32
  }
}

</mosaic_0001>

<bundles_post_ra>
// kernel: decoder_forward.1
= control target key start
LH: loop header
LB: loop body
LE: loop exit
PB: predicated region body
PF: predicated region fallthrough
CT: control target
= control target key end

     0   :  { %vm86_vm0 = vcmask 1041408   ;;  %v2733_v3 = vmov 0   ;;  %vm82_vm1 = vcmask 162816   ;;  %s3549_s0 = inlined_call_operand.vmem [shape: f32[8,20], index: 0, kind: input, shape index: {}]   ;;  %s3550_s1 = inlined_call_operand.vmem [shape: bf16[20,512], index: 1, kind: input, shape index: {}]   ;;  %s3551_s2 = inlined_call_operand.vmem [shape: f32[1,512], index: 2, kind: input, shape index: {}]   ;;  %s3552_s3 = inlined_call_operand.vmem [shape: bf16[512,784], index: 3, kind: input, shape index: {}]   ;;  %s3553_s4 = inlined_call_operand.vmem [shape: f32[1,784], index: 4, kind: input, shape index: {}]   ;;  %s3554_s5 = inlined_call_operand.hbm [shape: bf16[8,784], index: 5, kind: output, shape index: {}]  }
   0x1   :  { %v2351_v0 = vld [vmem:[%s3550_s1 + $0x4] ss:$16 sps:$4 sm:$0xff]   ;;  %v2353_v1 = vld [vmem:[%s3550_s1] ss:$16 sps:$4 sm:$0xff]   ;;  %131 = vmatprep.mubr.bf16.mxu1 %v2733_v3  ;;  %v2358_v7 = vld [vmem:[%s3550_s1 + $0xc] ss:$16 sps:$4 sm:$0xff]  }
   0x2   :  { %v28_v2 = vld [vmem:[%s3550_s1 + $0x20] sm:$0x33]  ;;  %99 = vmatprep.subr.bf16.mxu1 %v2351_v0  ;;  %v2356_v10 = vld [vmem:[%s3550_s1 + $0x8] ss:$16 sps:$4 sm:$0xff]   ;;  %v2373_v18 = vld [vmem:[%s3552_s3 + $0x74] ss:$28 sps:$4 sm:$0xff]  }
   0x3   :  { %v2048_v4 = vcombine.high %v28_v2, %v28_v2  ;;  %v2047_v5 = vcombine.low %v28_v2, %v28_v2  ;;  %100 = vmatpush1.bf16.msra.mxu1 %v2353_v1  ;;  %v22_v6 = vld [vmem:[%s3549_s0] sm:$0xff]  ;;  %v29_v11 = vld [vmem:[%s3550_s1 + $0x28] sm:$0x33]  ;;  %v2367_v14 = vld [vmem:[%s3552_s3 + $0x3c] ss:$28 sps:$4 sm:$0xff]  }
   0x4   :  { %v2361_v9 = vld [vmem:[%s3552_s3 + $0x4] ss:$28 sps:$4 sm:$0xff]   ;;  %v23_v12 = vpack.c.bf16 %v22_v6, %v22_v6  ;;  %v2050_v15 = vcombine.high %v29_v11, %v29_v11  ;;  %v2049_v16 = vcombine.low %v29_v11, %v29_v11  ;;  %v2372_v17 = vld [vmem:[%s3552_s3 + $0x38] ss:$28 sps:$4 sm:$0xff]   ;;  %v2365_v19 = vld [vmem:[%s3552_s3 + $0xc] ss:$28 sps:$4 sm:$0xff]  }
   0x5   :  { %2051 = vmatprep.subr.msk.bf16.mxu1 %vm86_vm0, %v2048_v4  ;;  %v88_v8 = vsel %vm86_vm0, %v2047_v5, 0  ;;  %1634 = vmatprep.subr.bf16.mxu0 %v2361_v9  ;;  %v2366_v13 = vld [vmem:[%s3552_s3] ss:$28 sps:$4 sm:$0xff]   ;;  %v2378_v21 = vld [vmem:[%s3552_s3 + $0x70] ss:$28 sps:$4 sm:$0xff]  }
   0x6   :  { %1635 = vmatpush1.bf16.msra.mxu0 %v2366_v13  ;;  %v94_v20 = vsel %vm86_vm0, %v2049_v16, 0  ;;  %v2379_v22 = vld [vmem:[%s3552_s3 + $0xac] ss:$28 sps:$4 sm:$0xff]   ;;  %v2371_v24 = vld [vmem:[%s3552_s3 + $0x44] ss:$28 sps:$4 sm:$0xff]  }
   0x7   :  { %102 = vmatpush1.bf16.msra.mxu1 %v88_v8  ;;  %1636 = vmatprep.subr.bf16.mxu0 %v2367_v14  ;;  %v2363_v23 = vld [vmem:[%s3552_s3 + $0x8] ss:$28 sps:$4 sm:$0xff]   ;;  %v2369_v27 = vld [vmem:[%s3552_s3 + $0x40] ss:$28 sps:$4 sm:$0xff]   ;;  %v2375_v31 = vld [vmem:[%s3552_s3 + $0x78] ss:$28 sps:$4 sm:$0xff]  }
   0x8   :  { %140 = vmatprep.subr.bf16.mxu1 %v2358_v7  ;;  %v2384_v25 = vld [vmem:[%s3552_s3 + $0xa8] ss:$28 sps:$4 sm:$0xff]   ;;  %v2377_v28 = vld [vmem:[%s3552_s3 + $0x7c] ss:$28 sps:$4 sm:$0xff]   ;;  %v2383_v32 = vld [vmem:[%s3552_s3 + $0xb4] ss:$28 sps:$4 sm:$0xff]  }
   0x9   :  { %v2385_v26 = vld [vmem:[%s3552_s3 + $0xe4] ss:$28 sps:$4 sm:$0xff]   ;;  %v2391_v30 = vld [vmem:[%s3552_s3 + $0x11c] ss:$28 sps:$4 sm:$0xff]   ;;  %v2397_v34 = vld [vmem:[%s3552_s3 + $0x154] ss:$28 sps:$4 sm:$0xff]  }
   0xa   :  { %2052 = vmatmul.mubr.msk.bf16.vlgmr.msra.gmra.mrb[0].mxu1 %vm82_vm1, %v23_v12  ;;  %1637 = vmatpush1.bf16.msra.mxu0 %v2372_v17  ;;  %v2390_v29 = vld [vmem:[%s3552_s3 + $0xe0] ss:$28 sps:$4 sm:$0xff]   ;;  %v2396_v33 = vld [vmem:[%s3552_s3 + $0x118] ss:$28 sps:$4 sm:$0xff]   ;;  %v2381_v35 = vld [vmem:[%s3552_s3 + $0xb0] ss:$28 sps:$4 sm:$0xff]  }
   0xb   :  { %141 = vmatpush1.bf16.msra.mxu1 %v2356_v10  ;;  %172 = vmatprep.mubr.bf16.mxu1 %v2733_v3  ;;  %v2389_v36 = vld [vmem:[%s3552_s3 + $0xec] ss:$28 sps:$4 sm:$0xff]   ;;  %v2395_v40 = vld [vmem:[%s3552_s3 + $0x124] ss:$28 sps:$4 sm:$0xff]   ;;  %v2401_v44 = vld [vmem:[%s3552_s3 + $0x15c] ss:$28 sps:$4 sm:$0xff]  }
   0xc   :  { %2053 = vmatprep.subr.msk.bf16.mxu1 %vm86_vm0, %v2050_v15  ;;  %1638 = vmatprep.subr.bf16.mxu0 %v2373_v18  ;;  %v2402_v37 = vld [vmem:[%s3552_s3 + $0x150] ss:$28 sps:$4 sm:$0xff]   ;;  %v2387_v39 = vld [vmem:[%s3552_s3 + $0xe8] ss:$28 sps:$4 sm:$0xff]   ;;  %v2393_v43 = vld [vmem:[%s3552_s3 + $0x120] ss:$28 sps:$4 sm:$0xff]  }
   0xd   :  { %v2403_v38 = vld [vmem:[%s3552_s3 + $0x18c] ss:$28 sps:$4 sm:$0xff]   ;;  %v2409_v42 = vld [vmem:[%s3552_s3 + $0x1c4] ss:$28 sps:$4 sm:$0xff]   ;;  %v2415_v46 = vld [vmem:[%s3552_s3 + $0x1fc] ss:$28 sps:$4 sm:$0xff]  }
   0xe   :  { %1639 = vmatpush1.bf16.msra.mxu0 %v2378_v21  ;;  %v2408_v41 = vld [vmem:[%s3552_s3 + $0x188] ss:$28 sps:$4 sm:$0xff]   ;;  %v2414_v45 = vld [vmem:[%s3552_s3 + $0x1c0] ss:$28 sps:$4 sm:$0xff]   ;;  %v2399_v47 = vld [vmem:[%s3552_s3 + $0x158] ss:$28 sps:$4 sm:$0xff]  }
   0xf   :  { %143 = vmatpush1.bf16.msra.mxu1 %v94_v20  ;;  %1640 = vmatprep.subr.bf16.mxu0 %v2379_v22  ;;  %v2407_v48 = vld [vmem:[%s3552_s3 + $0x194] ss:$28 sps:$4 sm:$0xff]   ;;  %v2413_v52 = vld [vmem:[%s3552_s3 + $0x1cc] ss:$28 sps:$4 sm:$0xff]   ;;  %v2419_v56 = vld [vmem:[%s3552_s3 + $0x204] ss:$28 sps:$4 sm:$0xff]  }
  0x10   :  { %1716 = vmatprep.subr.bf16.mxu1 %v2365_v19  ;;  %v2420_v49 = vld [vmem:[%s3552_s3 + $0x1f8] ss:$28 sps:$4 sm:$0xff]   ;;  %v2405_v50 = vld [vmem:[%s3552_s3 + $0x190] ss:$28 sps:$4 sm:$0xff]   ;;  %v2411_v55 = vld [vmem:[%s3552_s3 + $0x1c8] ss:$28 sps:$4 sm:$0xff]  }
  0x11   :  { %v2421_v51 = vld [vmem:[%s3552_s3 + $0x234] ss:$28 sps:$4 sm:$0xff]   ;;  %v2427_v54 = vld [vmem:[%s3552_s3 + $0x26c] ss:$28 sps:$4 sm:$0xff]   ;;  %v2433_v58 = vld [vmem:[%s3552_s3 + $0x2a4] ss:$28 sps:$4 sm:$0xff]  }
  0x12   :  { %2054 = vmatmul.mubr.msk.bf16.vlgmr.msra.gmra.mrb[4].mxu1 %vm82_vm1, %v23_v12  ;;  %1641 = vmatpush1.bf16.msra.mxu0 %v2384_v25  ;;  %v2426_v53 = vld [vmem:[%s3552_s3 + $0x230] ss:$28 sps:$4 sm:$0xff]   ;;  %v2432_v57 = vld [vmem:[%s3552_s3 + $0x268] ss:$28 sps:$4 sm:$0xff]   ;;  %v2417_v59 = vld [vmem:[%s3552_s3 + $0x200] ss:$28 sps:$4 sm:$0xff]  }
  0x13   :  { %1717 = vmatpush1.bf16.msra.mxu1 %v2363_v23  ;;  %1642 = vmatprep.subr.bf16.mxu0 %v2385_v26  ;;  %v2425_v60 = vld [vmem:[%s3552_s3 + $0x23c] ss:$28 sps:$4 sm:$0xff]   ;;  %v2431_v0 = vld [vmem:[%s3552_s3 + $0x274] ss:$28 sps:$4 sm:$0xff]   ;;  %v2437_v3 = vld [vmem:[%s3552_s3 + $0x2ac] ss:$28 sps:$4 sm:$0xff]  }
  0x14   :  { %1718 = vmatprep.subr.bf16.mxu1 %v2371_v24  ;;  %v2438_v61 = vld [vmem:[%s3552_s3 + $0x2a0] ss:$28 sps:$4 sm:$0xff]   ;;  %v2423_v63 = vld [vmem:[%s3552_s3 + $0x238] ss:$28 sps:$4 sm:$0xff]   ;;  %v2429_v2 = vld [vmem:[%s3552_s3 + $0x270] ss:$28 sps:$4 sm:$0xff]  }
  0x15   :  { %v2439_v62 = vld [vmem:[%s3552_s3 + $0x2dc] ss:$28 sps:$4 sm:$0xff]   ;;  %v2435_v4 = vld [vmem:[%s3552_s3 + $0x2a8] ss:$28 sps:$4 sm:$0xff]   ;;  %v2445_v7 = vld [vmem:[%s3552_s3 + $0x314] ss:$28 sps:$4 sm:$0xff]  }
  0x16   :  { %1643 = vmatpush1.bf16.msra.mxu0 %v2390_v29  ;;  %v2444_v1 = vld [vmem:[%s3552_s3 + $0x2d8] ss:$28 sps:$4 sm:$0xff]   ;;  %v2443_v5 = vld [vmem:[%s3552_s3 + $0x2e4] ss:$28 sps:$4 sm:$0xff]   ;;  %v2450_v10 = vld [vmem:[%s3552_s3 + $0x310] ss:$28 sps:$4 sm:$0xff]  }
  0x17   :  { %1719 = vmatpush1.bf16.msra.mxu1 %v2369_v27  ;;  %1644 = vmatprep.subr.bf16.mxu0 %v2391_v30  ;;  %v2441_v6 = vld [vmem:[%s3552_s3 + $0x2e0] ss:$28 sps:$4 sm:$0xff]   ;;  %v2447_v9 = vld [vmem:[%s3552_s3 + $0x318] ss:$28 sps:$4 sm:$0xff]   ;;  %v2451_v11 = vld [vmem:[%s3552_s3 + $0x34c] ss:$28 sps:$4 sm:$0xff]  }
  0x18   :  { %1720 = vmatprep.subr.bf16.mxu1 %v2377_v28  ;;  %v2449_v8 = vld [vmem:[%s3552_s3 + $0x31c] ss:$28 sps:$4 sm:$0xff]   ;;  %v2455_v12 = vld [vmem:[%s3552_s3 + $0x354] ss:$28 sps:$4 sm:$0xff]   ;;  %v2456_v14 = vld [vmem:[%s3552_s3 + $0x348] ss:$28 sps:$4 sm:$0xff]  }
  0x19   :  { %v2453_v13 = vld [vmem:[%s3552_s3 + $0x350] ss:$28 sps:$4 sm:$0xff]   ;;  %v2459_v15 = vld [vmem:[%s3552_s3 + $0x384] ss:$28 sps:$4 sm:$0xff]  }
  0x1a   :  { %1645 = vmatpush1.bf16.msra.mxu0 %v2396_v33  ;;  %v2462_v16 = vld [vmem:[%s3552_s3 + $0x38c] ss:$28 sps:$4 sm:$0xff]  }
  0x1b   :  { %1721 = vmatpush1.bf16.msra.mxu1 %v2375_v31  ;;  %1646 = vmatprep.subr.bf16.mxu0 %v2397_v34 }
  0x1c   :  { %1722 = vmatprep.subr.bf16.mxu1 %v2383_v32 }
  0x1e   :  { %1647 = vmatpush1.bf16.msra.mxu0 %v2402_v37 }
  0x1f   :  { %1723 = vmatpush1.bf16.msra.mxu1 %v2381_v35  ;;  %1648 = vmatprep.subr.bf16.mxu0 %v2403_v38 }
  0x20   :  { %1724 = vmatprep.subr.bf16.mxu1 %v2389_v36 }
  0x22   :  { %1649 = vmatpush1.bf16.msra.mxu0 %v2408_v41 }
  0x23   :  { %1725 = vmatpush1.bf16.msra.mxu1 %v2387_v39  ;;  %1650 = vmatprep.subr.bf16.mxu0 %v2409_v42 }
  0x24   :  { %1726 = vmatprep.subr.bf16.mxu1 %v2395_v40 }
  0x26   :  { %1651 = vmatpush1.bf16.msra.mxu0 %v2414_v45 }
  0x27   :  { %1727 = vmatpush1.bf16.msra.mxu1 %v2393_v43  ;;  %1652 = vmatprep.subr.bf16.mxu0 %v2415_v46 }
  0x28   :  { %1728 = vmatprep.subr.bf16.mxu1 %v2401_v44 }
  0x2a   :  { %1653 = vmatpush1.bf16.msra.mxu0 %v2420_v49 }
  0x2b   :  { %1729 = vmatpush1.bf16.msra.mxu1 %v2399_v47  ;;  %1654 = vmatprep.subr.bf16.mxu0 %v2421_v51 }
  0x2c   :  { %1730 = vmatprep.subr.bf16.mxu1 %v2407_v48 }
  0x2e   :  { %1655 = vmatpush1.bf16.msra.mxu0 %v2426_v53 }
  0x2f   :  { %1731 = vmatpush1.bf16.msra.mxu1 %v2405_v50  ;;  %1656 = vmatprep.subr.bf16.mxu0 %v2427_v54 }
  0x30   :  { %1732 = vmatprep.subr.bf16.mxu1 %v2413_v52 }
  0x32   :  { %1657 = vmatpush1.bf16.msra.mxu0 %v2432_v57 }
  0x33   :  { %1733 = vmatpush1.bf16.msra.mxu1 %v2411_v55  ;;  %1658 = vmatprep.subr.bf16.mxu0 %v2433_v58 }
  0x34   :  { %1734 = vmatprep.subr.bf16.mxu1 %v2419_v56 }
  0x36   :  { %1659 = vmatpush1.bf16.msra.mxu0 %v2438_v61 }
  0x37   :  { %1735 = vmatpush1.bf16.msra.mxu1 %v2417_v59  ;;  %1660 = vmatprep.subr.bf16.mxu0 %v2439_v62 }
  0x38   :  { %1736 = vmatprep.subr.bf16.mxu1 %v2425_v60 }
  0x3a   :  { %1661 = vmatpush1.bf16.msra.mxu0 %v2444_v1 }
  0x3b   :  { %1737 = vmatpush1.bf16.msra.mxu1 %v2423_v63  ;;  %1662 = vmatprep.subr.bf16.mxu0 %v2445_v7 }
  0x3c   :  { %1738 = vmatprep.subr.bf16.mxu1 %v2431_v0 }
  0x3e   :  { %1663 = vmatpush1.bf16.msra.mxu0 %v2450_v10 }
  0x3f   :  { %1739 = vmatpush1.bf16.msra.mxu1 %v2429_v2  ;;  %1664 = vmatprep.subr.bf16.mxu0 %v2451_v11 }
  0x40   :  { %1740 = vmatprep.subr.bf16.mxu1 %v2437_v3 }
  0x42   :  { %1665 = vmatpush1.bf16.msra.mxu0 %v2456_v14 }
  0x43   :  { %1741 = vmatpush1.bf16.msra.mxu1 %v2435_v4  ;;  %1675 = vmatprep.subr.bf16.mxu0 %v2459_v15 }
  0x44   :  { %1742 = vmatprep.subr.bf16.mxu1 %v2443_v5 }
  0x47   :  { %1743 = vmatpush1.bf16.msra.mxu1 %v2441_v6 }
  0x48   :  { %1744 = vmatprep.subr.bf16.mxu1 %v2449_v8 }
  0x4b   :  { %1745 = vmatpush1.bf16.msra.mxu1 %v2447_v9 }
  0x4c   :  { %1746 = vmatprep.subr.bf16.mxu1 %v2455_v12 }
  0x4f   :  { %1747 = vmatpush1.bf16.msra.mxu1 %v2453_v13 }
  0x50   :  { %1757 = vmatprep.subr.bf16.mxu1 %v2462_v16 }
  0x51   :  { %10 = vsyncpa [#allocation3], 0  ;;  %v32_v17 = vlaneseq  ;;  %v2996_v20 = vld [vmem:[%s3551_s2] sm:$0xf]  ;;  %v2460_v35 = vld [vmem:[%s3552_s3 + $0x388] ss:$28 sps:$4 sm:$0xff]  }
  0x52   :  { %v2457_v34 = vld [vmem:[%s3552_s3 + $0x380] ss:$28 sps:$4 sm:$0xff]   ;;  %v2463_v42 = vld [vmem:[%s3552_s3 + $0x3b8] ss:$28 sps:$4 sm:$0xff]   ;;  %v2469_v50 = vld [vmem:[%s3552_s3 + $0x3f0] ss:$28 sps:$4 sm:$0xff]  }
  0x53   :  { %v2990_v18 = vshrl.u32 %v32_v17, 7  ;;  %v2465_v38 = vld [vmem:[%s3552_s3 + $0x3bc] ss:$28 sps:$4 sm:$0xff]   ;;  %v2468_v39 = vld [vmem:[%s3552_s3 + $0x3c4] ss:$28 sps:$4 sm:$0xff]   ;;  %vm2027_vm2 = vcmask 125952  }
  0x54   :  { %v2466_v43 = vld [vmem:[%s3552_s3 + $0x3c0] ss:$28 sps:$4 sm:$0xff]   ;;  %v2471_v46 = vld [vmem:[%s3552_s3 + $0x3f4] ss:$28 sps:$4 sm:$0xff]   ;;  %v2477_v53 = vld [vmem:[%s3552_s3 + $0x42c] ss:$28 sps:$4 sm:$0xff]  }
  0x55   :  { %v34_v19 = vsub.s32 0, %v2990_v18  ;;  %v38_v21 = vsub.s32 1, %v2990_v18  ;;  %v46_v29 = vsub.s32 3, %v2990_v18  ;;  %v2474_v47 = vld [vmem:[%s3552_s3 + $0x3fc] ss:$28 sps:$4 sm:$0xff]  }
  0x56   :  { %v2472_v51 = vld [vmem:[%s3552_s3 + $0x3f8] ss:$28 sps:$4 sm:$0xff]   ;;  %v2475_v55 = vld [vmem:[%s3552_s3 + $0x428] ss:$28 sps:$4 sm:$0xff]   ;;  %v2478_v56 = vld [vmem:[%s3552_s3 + $0x430] ss:$28 sps:$4 sm:$0xff]  }
  0x57   :  { %v35_v22 = vrot.slane %v2996_v20, %v34_v19  ;;  %v39_v23 = vrot.slane %v2996_v20, %v38_v21  ;;  %v47_v36 = vrot.slane %v2996_v20, %v46_v29  ;;  %v2480_v54 = vld [vmem:[%s3552_s3 + $0x434] ss:$28 sps:$4 sm:$0xff]   ;;  %v2483_v57 = vld [vmem:[%s3552_s3 + $0x464] ss:$28 sps:$4 sm:$0xff]   ;;  %v2486_v58 = vld [vmem:[%s3552_s3 + $0x46c] ss:$28 sps:$4 sm:$0xff]  }
  0x58   :  { %v2481_v59 = vld [vmem:[%s3552_s3 + $0x460] ss:$28 sps:$4 sm:$0xff]   ;;  %v2484_v60 = vld [vmem:[%s3552_s3 + $0x468] ss:$28 sps:$4 sm:$0xff]   ;;  %v2487_v63 = vld [vmem:[%s3552_s3 + $0x498] ss:$28 sps:$4 sm:$0xff]  }
  0x59   :  { %v2489_v61 = vld [vmem:[%s3552_s3 + $0x49c] ss:$28 sps:$4 sm:$0xff]   ;;  %v2492_v62 = vld [vmem:[%s3552_s3 + $0x4a4] ss:$28 sps:$4 sm:$0xff]   ;;  %v2495_v1 = vld [vmem:[%s3552_s3 + $0x4d4] ss:$28 sps:$4 sm:$0xff]  }
  0x5a   :  { %v2490_v0 = vld [vmem:[%s3552_s3 + $0x4a0] ss:$28 sps:$4 sm:$0xff]   ;;  %v2493_v3 = vld [vmem:[%s3552_s3 + $0x4d0] ss:$28 sps:$4 sm:$0xff]   ;;  %v2496_v4 = vld [vmem:[%s3552_s3 + $0x4d8] ss:$28 sps:$4 sm:$0xff]  }
  0x5b   :  { %v2498_v2 = vld [vmem:[%s3552_s3 + $0x4dc] ss:$28 sps:$4 sm:$0xff]   ;;  %v2501_v5 = vld [vmem:[%s3552_s3 + $0x50c] ss:$28 sps:$4 sm:$0xff]   ;;  %v2504_v6 = vld [vmem:[%s3552_s3 + $0x514] ss:$28 sps:$4 sm:$0xff]  }
  0x5c   :  { %v2499_v7 = vld [vmem:[%s3552_s3 + $0x508] ss:$28 sps:$4 sm:$0xff]   ;;  %v2502_v8 = vld [vmem:[%s3552_s3 + $0x510] ss:$28 sps:$4 sm:$0xff]   ;;  %v2505_v11 = vld [vmem:[%s3552_s3 + $0x540] ss:$28 sps:$4 sm:$0xff]  }
  0x5d   :  { %v2507_v9 = vld [vmem:[%s3552_s3 + $0x544] ss:$28 sps:$4 sm:$0xff]   ;;  %v2510_v10 = vld [vmem:[%s3552_s3 + $0x54c] ss:$28 sps:$4 sm:$0xff]   ;;  %v2513_v13 = vld [vmem:[%s3552_s3 + $0x57c] ss:$28 sps:$4 sm:$0xff]  }
  0x5e   :  { %v2508_v12 = vld [vmem:[%s3552_s3 + $0x548] ss:$28 sps:$4 sm:$0xff]   ;;  %v2511_v15 = vld [vmem:[%s3552_s3 + $0x578] ss:$28 sps:$4 sm:$0xff]   ;;  %v2514_v16 = vld [vmem:[%s3552_s3 + $0x580] ss:$28 sps:$4 sm:$0xff]  }
  0x5f   :  { %v2516_v14 = vld [vmem:[%s3552_s3 + $0x584] ss:$28 sps:$4 sm:$0xff]   ;;  %v2519_v17 = vld [vmem:[%s3552_s3 + $0x5b4] ss:$28 sps:$4 sm:$0xff]  }
  0xdd   :  { %v133_v24 = vpop.f32.mrb[0].mxu1 }
  0xde   :  { %v134_v25 = vadd.f32 %v133_v24, %v35_v22  ;;  %v135_v26 = vpop.f32.mrb[1].mxu1  ;;  %v2522_v22 = vld [vmem:[%s3552_s3 + $0x5bc] ss:$28 sps:$4 sm:$0xff]  }
  0xdf   :  { %v136_v27 = vadd.f32 %v135_v26, %v39_v23  ;;  %v137_v28 = vpop.f32.mrb[2].mxu1  ;;  %v2517_v23 = vld [vmem:[%s3552_s3 + $0x5b0] ss:$28 sps:$4 sm:$0xff]   ;;  %v2520_v24 = vld [vmem:[%s3552_s3 + $0x5b8] ss:$28 sps:$4 sm:$0xff]  }
  0xe0   :  { %v181_v30 = vmax.f32 %v134_v25, 0.0  ;;  %v138_v31 = vpop.f32.mrb[3].mxu1  ;;  %v2525_v25 = vld [vmem:[%s3552_s3 + $0x5ec] ss:$28 sps:$4 sm:$0xff]   ;;  %v2528_v26 = vld [vmem:[%s3552_s3 + $0x5f4] ss:$28 sps:$4 sm:$0xff]  }
  0xe1   :  { %v182_v32 = vmax.f32 %v136_v27, 0.0  ;;  %v2523_v27 = vld [vmem:[%s3552_s3 + $0x5e8] ss:$28 sps:$4 sm:$0xff]   ;;  %v2526_v28 = vld [vmem:[%s3552_s3 + $0x5f0] ss:$28 sps:$4 sm:$0xff]  }
  0xe2   :  { %v3017_v37 = vpack.c.bf16 %v181_v30, %v181_v30  ;;  %v2531_v30 = vld [vmem:[%s3552_s3 + $0x624] ss:$28 sps:$4 sm:$0xff]   ;;  %v2534_v31 = vld [vmem:[%s3552_s3 + $0x62c] ss:$28 sps:$4 sm:$0xff]  }
  0xe3   :  { %v3006_v33 = vpack.c.bf16 %v182_v32, %v182_v32  ;;  %v42_v32 = vsub.s32 2, %v2990_v18 }
  0xe5   :  { %1666 = vmatprep.mubr.bf16.mxu0 %v3006_v33  ;;  %1748 = vmatprep.mubr.bf16.mxu1 %v3006_v33  ;;  %v3027_v40 = vpop.f32.mrb[4].mxu1 }
  0xe6   :  { %1667 = vmatmul.mubr.bf16.vlgmr.msra.gmra.mrb[0].mxu0 %v3017_v37  ;;  %1749 = vmatmul.mubr.bf16.vlgmr.msra.gmra.mrb[8].mxu1 %v3017_v37  ;;  %v176_v41 = vpop.f32.mrb[5].mxu1 }
  0xe7   :  { %1676 = vmatpush1.bf16.msra.mxu0 %v2457_v34  ;;  %1758 = vmatpush1.bf16.msra.mxu1 %v2460_v35  ;;  %v177_v44 = vadd.f32 %v176_v41, %v47_v36  ;;  %v178_v45 = vpop.f32.mrb[6].mxu1  ;;  %v2529_v34 = vld [vmem:[%s3552_s3 + $0x620] ss:$28 sps:$4 sm:$0xff]   ;;  %v2532_v35 = vld [vmem:[%s3552_s3 + $0x628] ss:$28 sps:$4 sm:$0xff]  }
  0xe8   :  { %1677 = vmatprep.subr.bf16.mxu0 %v2465_v38  ;;  %1759 = vmatprep.subr.bf16.mxu1 %v2468_v39  ;;  %v179_v48 = vpop.f32.mrb[7].mxu1  ;;  %v2537_v36 = vld [vmem:[%s3552_s3 + $0x65c] ss:$28 sps:$4 sm:$0xff]   ;;  %v2540_v38 = vld [vmem:[%s3552_s3 + $0x664] ss:$28 sps:$4 sm:$0xff]   ;;  %v43_v39 = vrot.slane %v2996_v20, %v42_v32 }
  0xe9   :  { %v184_v49 = vmax.f32 %v177_v44, 0.0  ;;  %v2535_v41 = vld [vmem:[%s3552_s3 + $0x658] ss:$28 sps:$4 sm:$0xff]   ;;  %v2541_v45 = vld [vmem:[%s3552_s3 + $0x690] ss:$28 sps:$4 sm:$0xff]  }
  0xea   :  { %v2546_v20 = vld [vmem:[%s3552_s3 + $0x69c] ss:$28 sps:$4 sm:$0xff]   ;;  %v175_v44 = vadd.f32 %v3027_v40, %v43_v39  ;;  %v2552_v40 = vld [vmem:[%s3552_s3 + $0x6d4] ss:$28 sps:$4 sm:$0xff]   ;;  %v2607_v39 = vld [vmem:[%s3552_s3 + $0x408] ss:$28 sps:$4 sm:$0xff]  }
  0xeb   :  { %1678 = vmatpush1.bf16.msra.mxu0 %v2463_v42  ;;  %1760 = vmatpush1.bf16.msra.mxu1 %v2466_v43  ;;  %v3049_v52 = vpack.c.bf16 %v184_v49, %v184_v49  ;;  %v2538_v42 = vld [vmem:[%s3552_s3 + $0x660] ss:$28 sps:$4 sm:$0xff]   ;;  %v2543_v43 = vld [vmem:[%s3552_s3 + $0x694] ss:$28 sps:$4 sm:$0xff]   ;;  %v2547_v49 = vld [vmem:[%s3552_s3 + $0x6c8] ss:$28 sps:$4 sm:$0xff]  }
  0xec   :  { %1679 = vmatprep.subr.bf16.mxu0 %v2471_v46  ;;  %1761 = vmatprep.subr.bf16.mxu1 %v2474_v47  ;;  %v2544_v46 = vld [vmem:[%s3552_s3 + $0x698] ss:$28 sps:$4 sm:$0xff]   ;;  %v2549_v47 = vld [vmem:[%s3552_s3 + $0x6cc] ss:$28 sps:$4 sm:$0xff]   ;;  %v183_v48 = vmax.f32 %v175_v44, 0.0 }
  0xed   :  { %1707 = vmatprep.mubr.bf16.mxu0 %v3049_v52  ;;  %1789 = vmatprep.mubr.bf16.mxu1 %v3049_v52  ;;  %v2615_v44 = vld [vmem:[%s3552_s3 + $0x2b4] ss:$28 sps:$4 sm:$0xff]  }
  0xef   :  { %1680 = vmatpush1.bf16.msra.mxu0 %v2469_v50  ;;  %1762 = vmatpush1.bf16.msra.mxu1 %v2472_v51  ;;  %v2550_v50 = vld [vmem:[%s3552_s3 + $0x6d0] ss:$28 sps:$4 sm:$0xff]  }
  0xf0   :  { %1681 = vmatprep.subr.bf16.mxu0 %v2477_v53  ;;  %1763 = vmatprep.subr.bf16.mxu1 %v2480_v54  ;;  %v2555_v51 = vld [vmem:[%s3552_s3 + $0x14] ss:$28 sps:$4 sm:$0xff]   ;;  %v3220_v54 = vpack.c.bf16 %v183_v48, %v183_v48 }
  0xf1   :  { %v2556_v53 = vld [vmem:[%s3552_s3 + $0x1d8] ss:$28 sps:$4 sm:$0xff]   ;;  %v2621_v48 = vld [vmem:[%s3552_s3 + $0x670] ss:$28 sps:$4 sm:$0xff]  }
  0xf3   :  { %1682 = vmatpush1.bf16.msra.mxu0 %v2475_v55  ;;  %1764 = vmatpush1.bf16.msra.mxu1 %v2478_v56  ;;  %v2553_v55 = vld [vmem:[%s3552_s3 + $0x10] ss:$28 sps:$4 sm:$0xff]   ;;  %v2557_v56 = vld [vmem:[%s3552_s3 + $0x18] ss:$28 sps:$4 sm:$0xff]  }
  0xf4   :  { %1683 = vmatprep.subr.bf16.mxu0 %v2483_v57  ;;  %1765 = vmatprep.subr.bf16.mxu1 %v2486_v58  ;;  %v2560_v57 = vld [vmem:[%s3552_s3 + $0x4c] ss:$28 sps:$4 sm:$0xff]  }
  0xf5   :  { %v2561_v58 = vld [vmem:[%s3552_s3 + $0x210] ss:$28 sps:$4 sm:$0xff]  }
  0xf7   :  { %1684 = vmatpush1.bf16.msra.mxu0 %v2481_v59  ;;  %1766 = vmatpush1.bf16.msra.mxu1 %v2484_v60  ;;  %v2558_v59 = vld [vmem:[%s3552_s3 + $0x48] ss:$28 sps:$4 sm:$0xff]   ;;  %v2562_v60 = vld [vmem:[%s3552_s3 + $0x50] ss:$28 sps:$4 sm:$0xff]  }
  0xf8   :  { %1685 = vmatprep.subr.bf16.mxu0 %v2489_v61  ;;  %1767 = vmatprep.subr.bf16.mxu1 %v2492_v62  ;;  %v2565_v61 = vld [vmem:[%s3552_s3 + $0x84] ss:$28 sps:$4 sm:$0xff]  }
  0xf9   :  { %v2566_v62 = vld [vmem:[%s3552_s3 + $0x248] ss:$28 sps:$4 sm:$0xff]  }
  0xfb   :  { %1686 = vmatpush1.bf16.msra.mxu0 %v2487_v63  ;;  %1768 = vmatpush1.bf16.msra.mxu1 %v2490_v0  ;;  %v2563_v63 = vld [vmem:[%s3552_s3 + $0x80] ss:$28 sps:$4 sm:$0xff]  }
  0xfc   :  { %1687 = vmatprep.subr.bf16.mxu0 %v2495_v1  ;;  %1769 = vmatprep.subr.bf16.mxu1 %v2498_v2  ;;  %v2570_v0 = vld [vmem:[%s3552_s3 + $0xbc] ss:$28 sps:$4 sm:$0xff]  }
  0xfd   :  { %v2571_v1 = vld [vmem:[%s3552_s3 + $0x280] ss:$28 sps:$4 sm:$0xff]   ;;  %v2568_v2 = vld [vmem:[%s3552_s3 + $0xb8] ss:$28 sps:$4 sm:$0xff]  }
  0xff   :  { %1688 = vmatpush1.bf16.msra.mxu0 %v2493_v3  ;;  %1770 = vmatpush1.bf16.msra.mxu1 %v2496_v4  ;;  %v2572_v3 = vld [vmem:[%s3552_s3 + $0xc0] ss:$28 sps:$4 sm:$0xff]   ;;  %v2575_v4 = vld [vmem:[%s3552_s3 + $0xf4] ss:$28 sps:$4 sm:$0xff]  }
 0x100   :  { %1689 = vmatprep.subr.bf16.mxu0 %v2501_v5  ;;  %1771 = vmatprep.subr.bf16.mxu1 %v2504_v6  ;;  %v2576_v5 = vld [vmem:[%s3552_s3 + $0x2b8] ss:$28 sps:$4 sm:$0xff]   ;;  %v2573_v6 = vld [vmem:[%s3552_s3 + $0xf0] ss:$28 sps:$4 sm:$0xff]  }
 0x103   :  { %1690 = vmatpush1.bf16.msra.mxu0 %v2499_v7  ;;  %1772 = vmatpush1.bf16.msra.mxu1 %v2502_v8  ;;  %v2577_v7 = vld [vmem:[%s3552_s3 + $0xf8] ss:$28 sps:$4 sm:$0xff]   ;;  %v2580_v8 = vld [vmem:[%s3552_s3 + $0x12c] ss:$28 sps:$4 sm:$0xff]  }
 0x104   :  { %1691 = vmatprep.subr.bf16.mxu0 %v2507_v9  ;;  %1773 = vmatprep.subr.bf16.mxu1 %v2510_v10  ;;  %v2581_v9 = vld [vmem:[%s3552_s3 + $0x2f0] ss:$28 sps:$4 sm:$0xff]   ;;  %v2578_v10 = vld [vmem:[%s3552_s3 + $0x128] ss:$28 sps:$4 sm:$0xff]  }
 0x107   :  { %1692 = vmatpush1.bf16.msra.mxu0 %v2505_v11  ;;  %1774 = vmatpush1.bf16.msra.mxu1 %v2508_v12  ;;  %v2582_v11 = vld [vmem:[%s3552_s3 + $0x130] ss:$28 sps:$4 sm:$0xff]   ;;  %v2585_v12 = vld [vmem:[%s3552_s3 + $0x164] ss:$28 sps:$4 sm:$0xff]  }
 0x108   :  { %1693 = vmatprep.subr.bf16.mxu0 %v2513_v13  ;;  %1775 = vmatprep.subr.bf16.mxu1 %v2516_v14  ;;  %v2586_v13 = vld [vmem:[%s3552_s3 + $0x328] ss:$28 sps:$4 sm:$0xff]   ;;  %v2583_v14 = vld [vmem:[%s3552_s3 + $0x160] ss:$28 sps:$4 sm:$0xff]  }
 0x10b   :  { %1694 = vmatpush1.bf16.msra.mxu0 %v2511_v15  ;;  %1776 = vmatpush1.bf16.msra.mxu1 %v2514_v16  ;;  %v2587_v15 = vld [vmem:[%s3552_s3 + $0x168] ss:$28 sps:$4 sm:$0xff]   ;;  %v2590_v16 = vld [vmem:[%s3552_s3 + $0x19c] ss:$28 sps:$4 sm:$0xff]  }
 0x10c   :  { %1695 = vmatprep.subr.bf16.mxu0 %v2519_v17  ;;  %1777 = vmatprep.subr.bf16.mxu1 %v2522_v22  ;;  %v2591_v17 = vld [vmem:[%s3552_s3 + $0x360] ss:$28 sps:$4 sm:$0xff]   ;;  %v2588_v22 = vld [vmem:[%s3552_s3 + $0x198] ss:$28 sps:$4 sm:$0xff]  }
 0x10f   :  { %1696 = vmatpush1.bf16.msra.mxu0 %v2517_v23  ;;  %1778 = vmatpush1.bf16.msra.mxu1 %v2520_v24  ;;  %v2592_v23 = vld [vmem:[%s3552_s3 + $0x1a0] ss:$28 sps:$4 sm:$0xff]   ;;  %v2595_v24 = vld [vmem:[%s3552_s3 + $0x1d4] ss:$28 sps:$4 sm:$0xff]  }
 0x110   :  { %1697 = vmatprep.subr.bf16.mxu0 %v2525_v25  ;;  %1779 = vmatprep.subr.bf16.mxu1 %v2528_v26  ;;  %v2596_v25 = vld [vmem:[%s3552_s3 + $0x558] ss:$28 sps:$4 sm:$0xff]   ;;  %v2593_v26 = vld [vmem:[%s3552_s3 + $0x1d0] ss:$28 sps:$4 sm:$0xff]  }
 0x113   :  { %1698 = vmatpush1.bf16.msra.mxu0 %v2523_v27  ;;  %1780 = vmatpush1.bf16.msra.mxu1 %v2526_v28  ;;  %v2597_v27 = vld [vmem:[%s3552_s3 + $0x398] ss:$28 sps:$4 sm:$0xff]   ;;  %v2600_v28 = vld [vmem:[%s3552_s3 + $0x20c] ss:$28 sps:$4 sm:$0xff]  }
 0x114   :  { %1699 = vmatprep.subr.bf16.mxu0 %v2531_v30  ;;  %1781 = vmatprep.subr.bf16.mxu1 %v2534_v31  ;;  %v2601_v30 = vld [vmem:[%s3552_s3 + $0x590] ss:$28 sps:$4 sm:$0xff]   ;;  %v2598_v31 = vld [vmem:[%s3552_s3 + $0x208] ss:$28 sps:$4 sm:$0xff]  }
 0x117   :  { %1700 = vmatpush1.bf16.msra.mxu0 %v2529_v34  ;;  %1782 = vmatpush1.bf16.msra.mxu1 %v2532_v35  ;;  %v2602_v34 = vld [vmem:[%s3552_s3 + $0x3d0] ss:$28 sps:$4 sm:$0xff]   ;;  %v2605_v35 = vld [vmem:[%s3552_s3 + $0x244] ss:$28 sps:$4 sm:$0xff]  }
 0x118   :  { %1701 = vmatprep.subr.bf16.mxu0 %v2537_v36  ;;  %1783 = vmatprep.subr.bf16.mxu1 %v2540_v38  ;;  %v2606_v36 = vld [vmem:[%s3552_s3 + $0x5c8] ss:$28 sps:$4 sm:$0xff]   ;;  %v2603_v38 = vld [vmem:[%s3552_s3 + $0x240] ss:$28 sps:$4 sm:$0xff]  }
 0x11b   :  { %1702 = vmatpush1.bf16.msra.mxu0 %v2535_v41  ;;  %1784 = vmatpush1.bf16.msra.mxu1 %v2538_v42  ;;  %v2610_v41 = vld [vmem:[%s3552_s3 + $0x27c] ss:$28 sps:$4 sm:$0xff]  }
 0x11c   :  { %1703 = vmatprep.subr.bf16.mxu0 %v2543_v43  ;;  %1785 = vmatprep.subr.bf16.mxu1 %v2546_v20  ;;  %v2611_v42 = vld [vmem:[%s3552_s3 + $0x600] ss:$28 sps:$4 sm:$0xff]   ;;  %v2608_v43 = vld [vmem:[%s3552_s3 + $0x278] ss:$28 sps:$4 sm:$0xff]  }
 0x11d   :  { %v2612_v20 = vld [vmem:[%s3552_s3 + $0x440] ss:$28 sps:$4 sm:$0xff]  }
 0x11f   :  { %1704 = vmatpush1.bf16.msra.mxu0 %v2541_v45  ;;  %1786 = vmatpush1.bf16.msra.mxu1 %v2544_v46  ;;  %v2616_v45 = vld [vmem:[%s3552_s3 + $0x638] ss:$28 sps:$4 sm:$0xff]   ;;  %v2613_v46 = vld [vmem:[%s3552_s3 + $0x2b0] ss:$28 sps:$4 sm:$0xff]  }
 0x120   :  { %1705 = vmatprep.subr.bf16.mxu0 %v2549_v47  ;;  %1787 = vmatprep.subr.bf16.mxu1 %v2552_v40  ;;  %v2617_v47 = vld [vmem:[%s3552_s3 + $0x478] ss:$28 sps:$4 sm:$0xff]   ;;  %v2620_v40 = vld [vmem:[%s3552_s3 + $0x2ec] ss:$28 sps:$4 sm:$0xff]  }
 0x123   :  { %1706 = vmatpush1.bf16.msra.mxu0 %v2547_v49  ;;  %1788 = vmatpush1.bf16.msra.mxu1 %v2550_v50  ;;  %v2618_v49 = vld [vmem:[%s3552_s3 + $0x2e8] ss:$28 sps:$4 sm:$0xff]   ;;  %v2622_v50 = vld [vmem:[%s3552_s3 + $0x4b0] ss:$28 sps:$4 sm:$0xff]  }
 0x124   :  { %1798 = vmatprep.subr.bf16.mxu0 %v2555_v51  ;;  %2287 = vmatprep.subr.bf16.mxu1 %v2556_v53  ;;  %v2625_v51 = vld [vmem:[%s3552_s3 + $0x324] ss:$28 sps:$4 sm:$0xff]  }
 0x125   :  { %v2626_v53 = vld [vmem:[%s3552_s3 + $0x6a8] ss:$28 sps:$4 sm:$0xff]  }
 0x126   :  { %1708 = vmatmul.mubr.bf16.vlgmr.msra.gmra.mrb[0].mxu0 %v3220_v54  ;;  %1790 = vmatmul.mubr.bf16.vlgmr.msra.gmra.mrb[8].mxu1 %v3220_v54 }
 0x127   :  { %1799 = vmatpush1.bf16.msra.mxu0 %v2553_v55  ;;  %1830 = vmatprep.mubr.bf16.mxu0 %v3006_v33  ;;  %v2623_v55 = vld [vmem:[%s3552_s3 + $0x320] ss:$28 sps:$4 sm:$0xff]  }
 0x128   :  { %2288 = vmatpush3.bf16.msra.mxu1 %v2557_v56  ;;  %1912 = vmatprep.mubr.bf16.mxu1 %v3006_v33  ;;  %v2567_v33 = vld [vmem:[%s3552_s3 + $0x88] ss:$28 sps:$4 sm:$0xff]  }
 0x129   :  { %1800 = vmatprep.subr.bf16.mxu0 %v2560_v57  ;;  %2289 = vmatprep.subr.bf16.mxu1 %v2561_v58  ;;  %v2627_v56 = vld [vmem:[%s3552_s3 + $0x4e8] ss:$28 sps:$4 sm:$0xff]   ;;  %v2630_v57 = vld [vmem:[%s3552_s3 + $0x35c] ss:$28 sps:$4 sm:$0xff]  }
 0x12a   :  { %v2631_v58 = vld [vmem:[%s3552_s3 + $0x6e0] ss:$28 sps:$4 sm:$0xff]  }
 0x12b   :  { %1801 = vmatpush1.bf16.msra.mxu0 %v2558_v59  ;;  %v2628_v59 = vld [vmem:[%s3552_s3 + $0x358] ss:$28 sps:$4 sm:$0xff]  }
 0x12c   :  { %2290 = vmatpush3.bf16.msra.mxu1 %v2562_v60  ;;  %1802 = vmatprep.subr.bf16.mxu0 %v2565_v61  ;;  %v2632_v60 = vld [vmem:[%s3552_s3 + $0x520] ss:$28 sps:$4 sm:$0xff]   ;;  %v2635_v61 = vld [vmem:[%s3552_s3 + $0x394] ss:$28 sps:$4 sm:$0xff]  }
 0x12d   :  { %2291 = vmatprep.subr.bf16.mxu1 %v2566_v62  ;;  %v2633_v62 = vld [vmem:[%s3552_s3 + $0x390] ss:$28 sps:$4 sm:$0xff]  }
 0x12f   :  { %1803 = vmatpush1.bf16.msra.mxu0 %v2563_v63  ;;  %v2638_v63 = vld [vmem:[%s3552_s3 + $0x3cc] ss:$28 sps:$4 sm:$0xff]  }
 0x130   :  { %2292 = vmatpush3.bf16.msra.mxu1 %v2567_v33  ;;  %1804 = vmatprep.subr.bf16.mxu0 %v2570_v0  ;;  %v2636_v33 = vld [vmem:[%s3552_s3 + $0x3c8] ss:$28 sps:$4 sm:$0xff]  }
 0x131   :  { %2293 = vmatprep.subr.bf16.mxu1 %v2571_v1  ;;  %v2641_v0 = vld [vmem:[%s3552_s3 + $0x404] ss:$28 sps:$4 sm:$0xff]  }
 0x132   :  { %v2639_v1 = vld [vmem:[%s3552_s3 + $0x400] ss:$28 sps:$4 sm:$0xff]  }
 0x133   :  { %1805 = vmatpush1.bf16.msra.mxu0 %v2568_v2  ;;  %v2647_v2 = vld [vmem:[%s3552_s3 + $0x474] ss:$28 sps:$4 sm:$0xff]  }
 0x134   :  { %2294 = vmatpush3.bf16.msra.mxu1 %v2572_v3  ;;  %1806 = vmatprep.subr.bf16.mxu0 %v2575_v4  ;;  %v2645_v3 = vld [vmem:[%s3552_s3 + $0x470] ss:$28 sps:$4 sm:$0xff]  }
 0x135   :  { %2295 = vmatprep.subr.bf16.mxu1 %v2576_v5  ;;  %v2650_v4 = vld [vmem:[%s3552_s3 + $0x4ac] ss:$28 sps:$4 sm:$0xff]  }
 0x136   :  { %v2648_v5 = vld [vmem:[%s3552_s3 + $0x4a8] ss:$28 sps:$4 sm:$0xff]  }
 0x137   :  { %1807 = vmatpush1.bf16.msra.mxu0 %v2573_v6  ;;  %v2653_v6 = vld [vmem:[%s3552_s3 + $0x4e4] ss:$28 sps:$4 sm:$0xff]  }
 0x138   :  { %2296 = vmatpush3.bf16.msra.mxu1 %v2577_v7  ;;  %1808 = vmatprep.subr.bf16.mxu0 %v2580_v8  ;;  %v2651_v7 = vld [vmem:[%s3552_s3 + $0x4e0] ss:$28 sps:$4 sm:$0xff]  }
 0x139   :  { %2297 = vmatprep.subr.bf16.mxu1 %v2581_v9  ;;  %v2656_v8 = vld [vmem:[%s3552_s3 + $0x51c] ss:$28 sps:$4 sm:$0xff]  }
 0x13a   :  { %v2654_v9 = vld [vmem:[%s3552_s3 + $0x518] ss:$28 sps:$4 sm:$0xff]  }
 0x13b   :  { %1809 = vmatpush1.bf16.msra.mxu0 %v2578_v10  ;;  %v2659_v10 = vld [vmem:[%s3552_s3 + $0x554] ss:$28 sps:$4 sm:$0xff]  }
 0x13c   :  { %2298 = vmatpush3.bf16.msra.mxu1 %v2582_v11  ;;  %1810 = vmatprep.subr.bf16.mxu0 %v2585_v12  ;;  %v2657_v11 = vld [vmem:[%s3552_s3 + $0x550] ss:$28 sps:$4 sm:$0xff]  }
 0x13d   :  { %2299 = vmatprep.subr.bf16.mxu1 %v2586_v13  ;;  %v2662_v12 = vld [vmem:[%s3552_s3 + $0x58c] ss:$28 sps:$4 sm:$0xff]  }
 0x13e   :  { %v2660_v13 = vld [vmem:[%s3552_s3 + $0x588] ss:$28 sps:$4 sm:$0xff]  }
 0x13f   :  { %1811 = vmatpush1.bf16.msra.mxu0 %v2583_v14  ;;  %v2665_v14 = vld [vmem:[%s3552_s3 + $0x5c4] ss:$28 sps:$4 sm:$0xff]  }
 0x140   :  { %2300 = vmatpush3.bf16.msra.mxu1 %v2587_v15  ;;  %1812 = vmatprep.subr.bf16.mxu0 %v2590_v16  ;;  %v2663_v15 = vld [vmem:[%s3552_s3 + $0x5c0] ss:$28 sps:$4 sm:$0xff]  }
 0x141   :  { %2301 = vmatprep.subr.bf16.mxu1 %v2591_v17  ;;  %v2668_v16 = vld [vmem:[%s3552_s3 + $0x5fc] ss:$28 sps:$4 sm:$0xff]  }
 0x142   :  { %v2666_v17 = vld [vmem:[%s3552_s3 + $0x5f8] ss:$28 sps:$4 sm:$0xff]  }
 0x143   :  { %1813 = vmatpush1.bf16.msra.mxu0 %v2588_v22  ;;  %v2671_v22 = vld [vmem:[%s3552_s3 + $0x634] ss:$28 sps:$4 sm:$0xff]  }
 0x144   :  { %2302 = vmatpush3.bf16.msra.mxu1 %v2592_v23  ;;  %1814 = vmatprep.subr.bf16.mxu0 %v2595_v24  ;;  %v2669_v23 = vld [vmem:[%s3552_s3 + $0x630] ss:$28 sps:$4 sm:$0xff]  }
 0x145   :  { %2309 = vmatprep.subr.bf16.mxu1 %v2596_v25  ;;  %v2674_v24 = vld [vmem:[%s3552_s3 + $0x66c] ss:$28 sps:$4 sm:$0xff]  }
 0x146   :  { %v2672_v25 = vld [vmem:[%s3552_s3 + $0x668] ss:$28 sps:$4 sm:$0xff]  }
 0x147   :  { %1913 = vmatmul.mubr.bf16.vlgmr.msra.gmra.mrb[12].mxu1 %v3017_v37  ;;  %1815 = vmatpush1.bf16.msra.mxu0 %v2593_v26  ;;  %v2677_v26 = vld [vmem:[%s3552_s3 + $0x6a4] ss:$28 sps:$4 sm:$0xff]  }
 0x148   :  { %2310 = vmatpush3.bf16.msra.mxu1 %v2597_v27  ;;  %1952 = vmatprep.mubr.bf16.mxu1 %v3049_v52  ;;  %v2675_v27 = vld [vmem:[%s3552_s3 + $0x6a0] ss:$28 sps:$4 sm:$0xff]  }
 0x149   :  { %1816 = vmatprep.subr.bf16.mxu0 %v2600_v28  ;;  %2311 = vmatprep.subr.bf16.mxu1 %v2601_v30  ;;  %v2680_v28 = vld [vmem:[%s3552_s3 + $0x6dc] ss:$28 sps:$4 sm:$0xff]  }
 0x14a   :  { %v2678_v30 = vld [vmem:[%s3552_s3 + $0x6d8] ss:$28 sps:$4 sm:$0xff]  }
 0x14b   :  { %1817 = vmatpush1.bf16.msra.mxu0 %v2598_v31  ;;  %v3517_v31 = vld [vmem:[%s3553_s4] sm:$0x7f] }
 0x14c   :  { %2312 = vmatpush3.bf16.msra.mxu1 %v2602_v34  ;;  %1818 = vmatprep.subr.bf16.mxu0 %v2605_v35  ;;  %v450_v34 = vrot.slane %v3517_v31, %v34_v19  ;;  %v458_v35 = vrot.slane %v3517_v31, %v42_v32 }
 0x14d   :  { %2313 = vmatprep.subr.bf16.mxu1 %v2606_v36  ;;  %v454_v36 = vrot.slane %v3517_v31, %v38_v21 }
 0x14f   :  { %1819 = vmatpush1.bf16.msra.mxu0 %v2603_v38 }
 0x150   :  { %2314 = vmatpush3.bf16.msra.mxu1 %v2607_v39  ;;  %1820 = vmatprep.subr.bf16.mxu0 %v2610_v41 }
 0x151   :  { %2315 = vmatprep.subr.bf16.mxu1 %v2611_v42 }
 0x153   :  { %1821 = vmatpush1.bf16.msra.mxu0 %v2608_v43 }
 0x154   :  { %2316 = vmatpush3.bf16.msra.mxu1 %v2612_v20  ;;  %1822 = vmatprep.subr.bf16.mxu0 %v2615_v44 }
 0x155   :  { %2317 = vmatprep.subr.bf16.mxu1 %v2616_v45 }
 0x157   :  { %1823 = vmatpush1.bf16.msra.mxu0 %v2613_v46 }
 0x158   :  { %2318 = vmatpush3.bf16.msra.mxu1 %v2617_v47  ;;  %1824 = vmatprep.subr.bf16.mxu0 %v2620_v40 }
 0x159   :  { %2319 = vmatprep.subr.bf16.mxu1 %v2621_v48 }
 0x15b   :  { %1825 = vmatpush1.bf16.msra.mxu0 %v2618_v49 }
 0x15c   :  { %2320 = vmatpush3.bf16.msra.mxu1 %v2622_v50  ;;  %1826 = vmatprep.subr.bf16.mxu0 %v2625_v51 }
 0x15d   :  { %2321 = vmatprep.subr.bf16.mxu1 %v2626_v53 }
 0x15f   :  { %1827 = vmatpush1.bf16.msra.mxu0 %v2623_v55 }
 0x160   :  { %2322 = vmatpush3.bf16.msra.mxu1 %v2627_v56  ;;  %1828 = vmatprep.subr.bf16.mxu0 %v2630_v57 }
 0x161   :  { %2323 = vmatprep.subr.bf16.mxu1 %v2631_v58 }
 0x163   :  { %1829 = vmatpush1.bf16.msra.mxu0 %v2628_v59 }
 0x164   :  { %2324 = vmatpush3.bf16.msra.mxu1 %v2632_v60  ;;  %1839 = vmatprep.subr.bf16.mxu0 %v2635_v61 }
 0x166   :  { %1831 = vmatmul.mubr.bf16.vlgmr.msra.gmra.mrb[4].mxu0 %v3017_v37  ;;  %v2644_v37 = vld [vmem:[%s3552_s3 + $0x43c] ss:$28 sps:$4 sm:$0xff]  }
 0x167   :  { %1953 = vmatmul.mubr.bf16.vlgmr.msra.gmra.mrb[16].mxu1 %v3220_v54  ;;  %1840 = vmatpush1.bf16.msra.mxu0 %v2633_v62 }
 0x168   :  { %1871 = vmatprep.mubr.bf16.mxu0 %v3049_v52  ;;  %1841 = vmatprep.subr.bf16.mxu0 %v2638_v63  ;;  %v2642_v52 = vld [vmem:[%s3552_s3 + $0x438] ss:$28 sps:$4 sm:$0xff]   ;;  %s2734_s3 = smov [#allocation2]  }
 0x169   :  { %s2035_s4 = sshll.u32 %s2734_s3, 4  ;;  %s2036_s4 = int_to_ptr.vmem [resolvable:$true] %s2035_s4 }
 0x16a   :  { %s2709_s1 = scalar_lea.vmem %s2036_s4, 448  ;;  %p2714_p1 = scmp.lt.s32.totalorder %s2036_s4, %s2036_s4 }
 0x16b   :  { %1842 = vmatpush1.bf16.msra.mxu0 %v2636_v33  ;;  %p2710_p0 = scmp.ne.s32.totalorder %s2036_s4, %s2709_s1  ;;  %p2715_p2 = scmp.lt.s32.totalorder %s2709_s1, %s2709_s1 }
 0x16c   :  { %1843 = vmatprep.subr.bf16.mxu0 %v2641_v0 }
 0x16d   :  { %p2716_p3 = por %p2715_p2, %p2714_p1 }
 0x16f   :  { %1844 = vmatpush1.bf16.msra.mxu0 %v2639_v1  ;;  %p2717_p4 = pnand %p2716_p3, %p2710_p0 }
 0x170   :  { %1845 = vmatprep.subr.bf16.mxu0 %v2644_v37 }
 0x173   :  { %1846 = vmatpush1.bf16.msra.mxu0 %v2642_v52 }
 0x174   :  { %1847 = vmatprep.subr.bf16.mxu0 %v2647_v2 }
 0x177   :  { %1848 = vmatpush1.bf16.msra.mxu0 %v2645_v3 }
 0x178   :  { %1849 = vmatprep.subr.bf16.mxu0 %v2650_v4 }
 0x17b   :  { %1850 = vmatpush1.bf16.msra.mxu0 %v2648_v5 }
 0x17c   :  { %1851 = vmatprep.subr.bf16.mxu0 %v2653_v6 }
 0x17f   :  { %1852 = vmatpush1.bf16.msra.mxu0 %v2651_v7  ;;  %v473_v7 = vsub.s32 6, %v2990_v18 }
 0x180   :  { %1853 = vmatprep.subr.bf16.mxu0 %v2656_v8 }
 0x181   :  { %v474_v8 = vrot.slane %v3517_v31, %v473_v7 }
 0x183   :  { %1854 = vmatpush1.bf16.msra.mxu0 %v2654_v9 }
 0x184   :  { %1855 = vmatprep.subr.bf16.mxu0 %v2659_v10 }
 0x187   :  { %1856 = vmatpush1.bf16.msra.mxu0 %v2657_v11 }
 0x188   :  { %1857 = vmatprep.subr.bf16.mxu0 %v2662_v12 }
 0x18b   :  { %1858 = vmatpush1.bf16.msra.mxu0 %v2660_v13 }
 0x18c   :  { %1859 = vmatprep.subr.bf16.mxu0 %v2665_v14 }
 0x18f   :  { %1860 = vmatpush1.bf16.msra.mxu0 %v2663_v15 }
 0x190   :  { %1861 = vmatprep.subr.bf16.mxu0 %v2668_v16 }
 0x193   :  { %1862 = vmatpush1.bf16.msra.mxu0 %v2666_v17 }
 0x194   :  { %1863 = vmatprep.subr.bf16.mxu0 %v2671_v22 }
 0x197   :  { %1864 = vmatpush1.bf16.msra.mxu0 %v2669_v23 }
 0x198   :  { %1865 = vmatprep.subr.bf16.mxu0 %v2674_v24 }
 0x19b   :  { %1866 = vmatpush1.bf16.msra.mxu0 %v2672_v25 }
 0x19c   :  { %1867 = vmatprep.subr.bf16.mxu0 %v2677_v26  ;;  %v465_v26 = vsub.s32 4, %v2990_v18 }
 0x19f   :  { %1868 = vmatpush1.bf16.msra.mxu0 %v2675_v27  ;;  %v469_v27 = vsub.s32 5, %v2990_v18 }
 0x1a0   :  { %1869 = vmatprep.subr.bf16.mxu0 %v2680_v28  ;;  %v466_v28 = vrot.slane %v3517_v31, %v465_v26 }
 0x1a3   :  { %1870 = vmatpush1.bf16.msra.mxu0 %v2678_v30  ;;  %v470_v30 = vrot.slane %v3517_v31, %v469_v27 }
 0x1a6   :  { %1872 = vmatmul.mubr.bf16.vlgmr.msra.gmra.mrb[4].mxu0 %v3220_v54  ;;  %v462_v54 = vrot.slane %v3517_v31, %v46_v29 }
 0x1f9   :  { %v1709_v38 = vpop.f32.mrb[0].mxu0  ;;  %v1791_v39 = vpop.f32.mrb[8].mxu1 }
 0x1fa   :  { %v2331_v41 = vadd.f32 %v1709_v38, %v450_v34  ;;  %v2333_v42 = vadd.f32 %v1791_v39, %v458_v35  ;;  %v1711_v43 = vpop.f32.mrb[1].mxu0  ;;  %v1793_v20 = vpop.f32.mrb[9].mxu1 }
 0x1fb   :  { %v2332_v44 = vadd.f32 %v1711_v43, %v454_v36  ;;  %v2334_v19 = vadd.f32 %v1793_v20, %v462_v54  ;;  %v1713_v45 = vpop.f32.mrb[2].mxu0  ;;  %v1795_v46 = vpop.f32.mrb[10].mxu1 }
 0x1fc   :  { %v1960_v47 = vsub.f32 0.0, %v2331_v41  ;;  %v1962_v32 = vsub.f32 0.0, %v2333_v42  ;;  %v1714_v40 = vpop.f32.mrb[3].mxu0  ;;  %v1796_v48 = vpop.f32.mrb[11].mxu1 }
 0x1fd   :  { %v1961_v49 = vsub.f32 0.0, %v2332_v44  ;;  %v1963_v21 = vsub.f32 0.0, %v2334_v19 }
 0x1fe   :  { %v1967_v50 = vmul.f32 1.442695, %v1960_v47  ;;  %v1971_v51 = vmul.f32 1.442695, %v1962_v32 }
 0x1ff   :  { %v1969_v53 = vmul.f32 1.442695, %v1961_v49  ;;  %v1973_v29 = vmul.f32 1.442695, %v1963_v21 }
 0x200   :  { %2681 = vpow2.f32 %v1967_v50 }
 0x201   :  { %2683 = vpow2.f32 %v1971_v51 }
 0x202   :  { %2685 = vpow2.f32 %v1969_v53 }
 0x203   :  { %2687 = vpow2.f32 %v1973_v29 }
 0x20a   :  { %v2682_v55 = vpop.eup %2681 }
 0x20b   :  { %v2684_v56 = vpop.eup %2683  ;;  %v1981_v57 = vadd.f32 1.0, %v2682_v55 }
 0x20c   :  { %v2686_v58 = vpop.eup %2685  ;;  %v1983_v59 = vadd.f32 1.0, %v2684_v56 }
 0x20d   :  { %v2688_v60 = vpop.eup %2687  ;;  %2689 = vrcp.f32 %v1981_v57  ;;  %v1982_v61 = vadd.f32 1.0, %v2686_v58 }
 0x20e   :  { %2691 = vrcp.f32 %v1983_v59  ;;  %v1984_v62 = vadd.f32 1.0, %v2688_v60 }
 0x20f   :  { %2693 = vrcp.f32 %v1982_v61 }
 0x210   :  { %2695 = vrcp.f32 %v1984_v62 }
 0x217   :  { %v2690_v63 = vpop.eup %2689 }
 0x218   :  { %v2692_v33 = vpop.eup %2691 }
 0x219   :  { %v2694_v0 = vpop.eup %2693 }
 0x21a   :  { %v2696_v1 = vpop.eup %2695  ;;  %v2303_v37 = vpop.f32.mrb[12].mxu1  ;;  %v2283_v52 = vpack.c.bf16 %v2694_v0, %v2690_v63 }
 0x21b   :  { %v2304_v2 = vpop.f32.mrb[13].mxu1  ;;  %v2284_v3 = vpack.c.bf16 %v2696_v1, %v2692_v33 }
 0x21c   :  { %v2305_v4 = vadd.f32 %v2304_v2, %v2303_v37  ;;  %v2306_v5 = vpop.f32.mrb[14].mxu1  ;;  %2024 = vst [vmem:[#allocation2] sm:$0xff] %v2283_v52 }
 0x21d   :  { %v2307_v6 = vpop.f32.mrb[15].mxu1  ;;  %2025 = vst [vmem:[#allocation2 + $0x8] sm:$0xff] %v2284_v3 }
 0x21e   :  { %v1915_v11 = vadd.f32 %v2305_v4, %v474_v8 }
 0x23a   :  { %v2325_v9 = vpop.f32.mrb[16].mxu1 }
 0x23b   :  { %v2326_v10 = vpop.f32.mrb[17].mxu1 }
 0x23c   :  { %v2327_v12 = vadd.f32 %v2326_v10, %v2325_v9  ;;  %v2328_v13 = vpop.f32.mrb[18].mxu1 }
 0x23d   :  { %v2329_v14 = vpop.f32.mrb[19].mxu1 }
 0x23e   :  { %v1955_v15 = vadd.f32 %v2327_v12, %v1915_v11 }
 0x240   :  { %v1966_v16 = vsub.f32 0.0, %v1955_v15 }
 0x242   :  { %v1979_v17 = vmul.f32 1.442695, %v1966_v16 }
 0x244   :  { %2697 = vpow2.f32 %v1979_v17 }
 0x24e   :  { %v2698_v22 = vpop.eup %2697 }
 0x24f   :  { %v1987_v23 = vadd.f32 1.0, %v2698_v22 }
 0x251   :  { %2699 = vrcp.f32 %v1987_v23 }
 0x25b   :  { %v2700_v24 = vpop.eup %2699 }
 0x25c   :  { %v2286_v25 = vpack.c.bf16 %v2700_v24, %v2700_v24 }
 0x25e   :  { %2028 = vst.msk [vmem:[#allocation2 + $0x18] sm:$0xf] %vm2027_vm2, %v2286_v25 }
 0x279   :  { %v1873_v34 = vpop.f32.mrb[4].mxu0 }
 0x27a   :  { %v2335_v35 = vadd.f32 %v1873_v34, %v466_v28  ;;  %v1875_v36 = vpop.f32.mrb[5].mxu0 }
 0x27b   :  { %v2336_v54 = vadd.f32 %v1875_v36, %v470_v30  ;;  %v1877_v38 = vpop.f32.mrb[6].mxu0 }
 0x27c   :  { %v1964_v39 = vsub.f32 0.0, %v2335_v35  ;;  %v1878_v41 = vpop.f32.mrb[7].mxu0 }
 0x27d   :  { %v1965_v42 = vsub.f32 0.0, %v2336_v54 }
 0x27e   :  { %v1975_v43 = vmul.f32 1.442695, %v1964_v39 }
 0x27f   :  { %v1977_v20 = vmul.f32 1.442695, %v1965_v42 }
 0x280   :  { %2701 = vpow2.f32 %v1975_v43 }
 0x281   :  { %2703 = vpow2.f32 %v1977_v20 }
 0x28a   :  { %v2702_v44 = vpop.eup %2701 }
 0x28b   :  { %v2704_v19 = vpop.eup %2703  ;;  %v1985_v45 = vadd.f32 1.0, %v2702_v44 }
 0x28c   :  { %v1986_v18 = vadd.f32 1.0, %v2704_v19 }
 0x28d   :  { %2705 = vrcp.f32 %v1985_v45 }
 0x28e   :  { %2707 = vrcp.f32 %v1986_v18 }
 0x297   :  { %v2706_v31 = vpop.eup %2705 }
 0x298   :  { %v2708_v46 = vpop.eup %2707 }
 0x299   :  { %v2285_v47 = vpack.c.bf16 %v2708_v46, %v2706_v31 }
 0x29b   :  { %2026 = vst [vmem:[#allocation2 + $0x10] sm:$0xff] %v2285_v47 }
 0x29c   :  { %2720 = shalt.err (!%p2717_p4)
}
 0x29d   :  { %s2721_s16 = scalar_lea.hbm %s3554_s5, 448 }
 0x29e   :  { %p2722_p5 = scmp.ne.s32.totalorder %s3554_s5, %s2721_s16  ;;  %p2725_p6 = scmp.lt.u32.totalorder %s2721_s16, %s3554_s5 }
 0x2a0   :  { %p2727_p7 = pnand %p2725_p6, %p2722_p5 }
 0x2a2   :  { %2730 = shalt.err (!%p2727_p7)
}
 0x2a3   :  { %2038 = dma.vmem_to_hbm [thread:$0]  %s2036_s4, 448, %s3554_s5, [#allocation3]  }
 0x2a4   :  { %2731 = dma.done.wait [#allocation3], 448  }
 0x2a5   :  { %2732 = vsyncadd [#allocation3], 4294966848 }
 0x2a6   :  { %2042 = vsyncpa [#allocation3], 1 }

</bundles_post_ra>
